<compile_context>
chip_gen: v5e
topology: v5e:2x2
jax: 0.10.0
libtpu: 0.0.40
codegen_flags: <defaults>
</compile_context>

<pallas_src>
import jax
import jax.numpy as jnp
import numpy as np
from jax.experimental import pallas as pl
from jax.experimental.pallas import tpu as pltpu


def _round_up(x, m):
    return ((x + m - 1) // m) * m


def _pick_tile(n, candidates=(2048, 1024, 512, 256, 128, 64, 32, 16, 8)):
    """Minimize padded total; among those prefer >=2 grid steps (v7x has two
    TensorCores on the parallel axis); then prefer the largest tile."""
    best_key, best_c = None, None
    for c in candidates:
        n_pad = _round_up(n, c)
        steps = n_pad // c
        key = (n_pad, 0 if steps >= 2 else 1, -c)
        if best_key is None or key < best_key:
            best_key, best_c = key, c
    return best_c


# ----------------------------- Pallas kernels ------------------------------ #

def _make_conv_kernel(taps, n_planes, e_pad):
    """taps: static tuple of (tap_index, parity_plane, lane_offset)."""

    def kernel(planes_ref, w_ref, b_ref, o_ref):
        # planes_ref: [1, n_planes, C_in_pad, L_pad] (compute dtype)
        # w_ref:      [n_taps, C_out_pad, C_in_pad]  (resident, fetched once)
        # b_ref:      [C_out_pad, 1] f32
        # o_ref:      [1, C_out_pad, E_pad] f32
        acc = None
        for p in range(n_planes):
            plane_taps = [(t, off) for (t, pp, off) in taps if pp == p]
            if not plane_taps:
                continue
            plane = planes_ref[0, p, :, :]                    # [C_in_pad, L_pad]
            for t, off in plane_taps:                          # static unroll
                xw = plane[:, off:off + e_pad]                 # static lane slice
                part = jnp.dot(w_ref[t, :, :], xw,
                               preferred_element_type=jnp.float32)
                acc = part if acc is None else acc + part
        o_ref[0, :, :] = acc + b_ref[...]                      # fused bias epilogue

    return kernel


def _squash_lane_kernel(x_ref, g_ref, o_ref):
    # x_ref/o_ref: [TR, 128] f32; g_ref: [128, 128] capsule-grouping matrix.
    # (x*x) @ g gives every lane its capsule's squared L2 norm via the MXU
    # (segment-sum + broadcast without touching the XLU).
    x = x_ref[...]
    sq = jnp.dot(x * x, g_ref[...], preferred_element_type=jnp.float32)
    norm = jnp.sqrt(sq)
    scale = sq * pl.reciprocal((1.0 + sq) * (norm + 1e-8), approx=True)
    o_ref[...] = (x * scale).astype(o_ref.dtype)


def _squash_rows_kernel(x_ref, o_ref):
    # Fallback layout (dim_caps does not divide 128): squash along last axis.
    x = x_ref[...]
    sq = jnp.sum(x * x, axis=-1, keepdims=True)
    norm = jnp.sqrt(sq)
    scale = sq * pl.reciprocal((1.0 + sq) * (norm + 1e-8), approx=True)
    o_ref[...] = (x * scale).astype(o_ref.dtype)


# ------------------------------ squash wrappers ----------------------------- #

def _squash_lane_dense(caps_flat, dim_caps):
    """caps_flat: [L] f32; capsules are consecutive chunks of dim_caps, dim_caps | 128."""
    n = caps_flat.shape[0]
    rows = -(-n // 128)
    TR = _pick_tile(rows)
    rows_pad = _round_up(rows, TR)

    xf = jnp.pad(caps_flat, (0, rows_pad * 128 - n)).reshape(rows_pad, 128)
    lane_group = jnp.arange(128) // dim_caps
    g = (lane_group[:, None] == lane_group[None, :]).astype(jnp.float32)

    out = pl.pallas_call(
        _squash_lane_kernel,
        out_shape=jax.ShapeDtypeStruct((rows_pad, 128), jnp.float32),
        grid=(rows_pad // TR,),
        in_specs=[
            pl.BlockSpec((TR, 128), lambda r: (r, 0)),
            pl.BlockSpec((128, 128), lambda r: (0, 0)),
        ],
        out_specs=pl.BlockSpec((TR, 128), lambda r: (r, 0)),
        compiler_params=pltpu.CompilerParams(
            dimension_semantics=("parallel",),
            vmem_limit_bytes=32 * 1024 * 1024,
        ),
    )(xf, g)
    return out.reshape(-1)[:n]


def _squash_rows(caps_flat, dim_caps):
    n_elem = caps_flat.shape[0]
    n = n_elem // dim_caps
    TR = _pick_tile(n)
    n_pad = _round_up(n, TR)

    xf = jnp.pad(caps_flat, (0, (n_pad - n) * dim_caps)).reshape(n_pad, dim_caps)
    out = pl.pallas_call(
        _squash_rows_kernel,
        out_shape=jax.ShapeDtypeStruct((n_pad, dim_caps), jnp.float32),
        grid=(n_pad // TR,),
        in_specs=[pl.BlockSpec((TR, dim_caps), lambda r: (r, 0))],
        out_specs=pl.BlockSpec((TR, dim_caps), lambda r: (r, 0)),
        compiler_params=pltpu.CompilerParams(
            dimension_semantics=("parallel",),
            vmem_limit_bytes=32 * 1024 * 1024,
        ),
    )(xf)
    return out.reshape(-1)[:n_elem]


# ------------------------------ JAX wrapper -------------------------------- #

def primary_capsule_forward(x, weight, bias, dim_caps, stride=1, padding=0,
                            compute_dtype=jnp.bfloat16):
    """x: [B, C_in, H, W] (NCHW), weight: [C_out, C_in, KH, KW], bias: [C_out].

    Pass compute_dtype=jnp.float32 for a tighter-accuracy (non-bf16-MXU) path.
    """
    B, C_in, H, W = x.shape
    C_out, _, KH, KW = weight.shape
    s = stride

    # --- conv geometry ---
    Hp, Wp = H + 2 * padding, W + 2 * padding
    Hout = (Hp - KH) // s + 1
    Wout = (Wp - KW) // s + 1
    S = Hout * Wout
    assert (C_out * S) % dim_caps == 0, "C_out*H'*W' must be divisible by dim_caps"
    num_caps = (C_out * S) // dim_caps

    Hq = -(-Hp // s)
    Wq = -(-Wp // s)
    Hs, Ws = Hq * s, Wq * s
    n_planes = s * s
    L = Hq * Wq

    # "extended" output columns e = h'*Wq + w'; the (Wq - Wout) gap columns are
    # computed but cropped afterwards, avoiding any in-kernel reshape.
    E = Hout * Wq
    E_pad = _round_up(E, 128)

    # static tap table: tap (kh, kw) reads parity plane p at lane offset off.
    taps = []
    max_off = 0
    for kh in range(KH):
        for kw in range(KW):
            p = (kh % s) * s + (kw % s)
            off = (kh // s) * Wq + (kw // s)
            taps.append((kh * KW + kw, p, off))
            max_off = max(max_off, off)
    taps = tuple(taps)
    L_pad = _round_up(max(L, max_off + E_pad), 128)

    C_in_pad = _round_up(C_in, 16)     # 16-sublane bf16 packing
    C_out_pad = _round_up(C_out, 16)

    # --- ONE size-preserving space-to-depth pass over x (no KH*KW blow-up) ---
    xp = jnp.pad(x, ((0, 0), (0, 0),
                     (padding, padding + (Hs - Hp)),
                     (padding, padding + (Ws - Wp))))
    planes = jnp.transpose(
        xp.reshape(B, C_in, Hq, s, Wq, s), (0, 3, 5, 1, 2, 4)
    ).reshape(B, n_planes, C_in, L)
    planes = jnp.pad(
        planes, ((0, 0), (0, 0), (0, C_in_pad - C_in), (0, L_pad - L))
    ).astype(compute_dtype)

    # --- per-tap weights [C_out, C_in], resident in VMEM for the whole grid ---
    w_taps = jnp.transpose(weight, (2, 3, 0, 1)).reshape(KH * KW, C_out, C_in)
    w_taps = jnp.pad(
        w_taps, ((0, 0), (0, C_out_pad - C_out), (0, C_in_pad - C_in))
    ).astype(compute_dtype)
    b_col = jnp.pad(bias.astype(jnp.float32).reshape(C_out, 1),
                    ((0, C_out_pad - C_out), (0, 0)))

    conv_kernel = _make_conv_kernel(taps, n_planes, E_pad)
    conv_ext = pl.pallas_call(
        conv_kernel,
        out_shape=jax.ShapeDtypeStruct((B, C_out_pad, E_pad), jnp.float32),
        grid=(B,),
        in_specs=[
            pl.BlockSpec((1, n_planes, C_in_pad, L_pad), lambda b: (b, 0, 0, 0)),
            # constant index_map -> weights DMA'd once, never re-streamed
            pl.BlockSpec((KH * KW, C_out_pad, C_in_pad), lambda b: (0, 0, 0)),
            pl.BlockSpec((C_out_pad, 1), lambda b: (0, 0)),
        ],
        out_specs=pl.BlockSpec((1, C_out_pad, E_pad), lambda b: (b, 0, 0)),
        compiler_params=pltpu.CompilerParams(
            dimension_semantics=("parallel",),
            vmem_limit_bytes=48 * 1024 * 1024,   # <= v7x 64 MiB physical
        ),
    )(planes, w_taps, b_col)

    # crop extended columns back to (h', w') and flatten in PyTorch's
    # .view(B, -1, dim_caps) order (c_out major, then h', then w').
    conv_v = conv_ext[:, :C_out, :E].reshape(B, C_out, Hout, Wq)[:, :, :, :Wout]
    caps_flat = conv_v.reshape(B * C_out * S)

    if 128 % dim_caps == 0:
        sq_flat = _squash_lane_dense(caps_flat, dim_caps)
    else:
        sq_flat = _squash_rows(caps_flat, dim_caps)

    return sq_flat.reshape(B, num_caps, dim_caps)


primary_capsule_forward_jit = jax.jit(
    primary_capsule_forward,
    static_argnames=("dim_caps", "stride", "padding", "compute_dtype"),
)


# ------------------------- reference / parameters --------------------------- #

def _reference_forward(x, weight, bias, dim_caps, stride, padding):
    out = jax.lax.conv_general_dilated(
        x, weight, window_strides=(stride, stride),
        padding=((padding, padding), (padding, padding)),
        dimension_numbers=("NCHW", "OIHW", "NCHW"))
    out = out + bias[None, :, None, None]
    caps = out.reshape(x.shape[0], -1, dim_caps)
    norm = jnp.linalg.norm(caps, axis=-1, keepdims=True)
    scale = norm ** 2 / (1.0 + norm ** 2) / (norm + 1e-8)
    return scale * caps


def init_primary_capsule_params(key, in_channels, out_channels, kernel_size):
    """PyTorch Conv2d default init: U(-1/sqrt(fan_in), 1/sqrt(fan_in))."""
    k_w, k_b = jax.random.split(key)
    fan_in = in_channels * kernel_size * kernel_size
    bound = 1.0 / float(np.sqrt(fan_in))
    weight = jax.random.uniform(
        k_w, (out_channels, in_channels, kernel_size, kernel_size),
        dtype=jnp.float32, minval=-bound, maxval=bound,
    )
    bias = jax.random.uniform(
        k_b, (out_channels,), dtype=jnp.float32, minval=-bound, maxval=bound
    )
    return weight, bias


# ----------------------------------- main ----------------------------------- #

if __name__ == "__main__":
    # PrimaryCapsule(in_channels=4, out_channels=16, dim_caps=8, kernel_size=3, stride=2)
    B, C_in, H, W = 2, 4, 16, 16
    C_out, dim_caps, ksize, stride, padding = 16, 8, 3, 2, 0

    key = jax.random.PRNGKey(0)
    k_x, k_p = jax.random.split(key)
    x = jax.random.normal(k_x, (B, C_in, H, W), dtype=jnp.float32)
    weight, bias = init_primary_capsule_params(k_p, C_in, C_out, ksize)

    out = primary_capsule_forward_jit(
        x, weight, bias, dim_caps=dim_caps, stride=stride, padding=padding)
    out = jax.block_until_ready(out)

    # Expected: [B, C_out*H'*W'//dim_caps, dim_caps] = [2, 98, 8]
    assert out.shape == (B, (C_out * 7 * 7) // dim_caps, dim_caps), out.shape

    # light numerical sanity check vs pure-JAX reference (bf16-MXU tolerance)
    ref = _reference_forward(x, weight, bias, dim_caps, stride, padding)
    np.testing.assert_allclose(np.asarray(out), np.asarray(ref),
                               atol=3e-2, rtol=3e-2)

    print("KERNEL_OK")
</pallas_src>

<mosaic_0001>
module attributes {stable_mosaic.version = 11 : i64} {
  func.func @kernel(%arg0: i32, %arg1: memref<1x4x16x256xbf16, #tpu.memory_space<vmem>>, %arg2: memref<9x16x16xbf16, #tpu.memory_space<vmem>>, %arg3: memref<16x1xf32, #tpu.memory_space<vmem>>, %arg4: memref<1x16x128xf32, #tpu.memory_space<vmem>>) attributes {dimension_semantics = [#tpu.dimension_semantics<parallel>], iteration_bounds = array<i64: 2>, scalar_prefetch = 0 : i64, scratch_operands = 0 : i64, tpu.core_type = #tpu.core_type<tc>, window_params = [{transform_indices = @transform_0, window_bounds = array<i64: 1, 4, 16, 256>}, {pipeline_mode = #tpu.pipeline_mode<synchronous>, transform_indices = @transform_1, window_bounds = array<i64: 9, 16, 16>}, {pipeline_mode = #tpu.pipeline_mode<synchronous>, transform_indices = @transform_2, window_bounds = array<i64: 16, 1>}, {transform_indices = @transform_3, window_bounds = array<i64: 1, 16, 128>}]} {
    %c0 = arith.constant 0 : index
    %c0_0 = arith.constant 0 : index
    %c0_1 = arith.constant 0 : index
    %c0_2 = arith.constant 0 : index
    %0 = vector.load %arg1[%c0, %c0_0, %c0_1, %c0_2] : memref<1x4x16x256xbf16, #tpu.memory_space<vmem>>, vector<1x1x16x256xbf16>
    %1 = vector.shape_cast %0 : vector<1x1x16x256xbf16> to vector<16x256xbf16>
    %2 = vector.extract_strided_slice %1 {offsets = [0, 0], sizes = [16, 128], strides = [1, 1]} : vector<16x256xbf16> to vector<16x128xbf16>
    %c0_3 = arith.constant 0 : index
    %c0_4 = arith.constant 0 : index
    %c0_5 = arith.constant 0 : index
    %3 = vector.load %arg2[%c0_3, %c0_4, %c0_5] : memref<9x16x16xbf16, #tpu.memory_space<vmem>>, vector<1x16x16xbf16>
    %4 = vector.shape_cast %3 : vector<1x16x16xbf16> to vector<16x16xbf16>
    %cst = arith.constant dense<0.000000e+00> : vector<16x128xf32>
    %5 = tpu.matmul %4, %2, %cst {dimension_numbers = #tpu.dot_dimension_numbers<[1], [0], [0], [1], [0, 0, 1, 1], [], []>} : vector<16x16xbf16>, vector<16x128xbf16>, vector<16x128xf32> -> vector<16x128xf32>
    %6 = vector.extract_strided_slice %1 {offsets = [0, 1], sizes = [16, 128], strides = [1, 1]} : vector<16x256xbf16> to vector<16x128xbf16>
    %c2 = arith.constant 2 : index
    %c0_6 = arith.constant 0 : index
    %c0_7 = arith.constant 0 : index
    %7 = vector.load %arg2[%c2, %c0_6, %c0_7] : memref<9x16x16xbf16, #tpu.memory_space<vmem>>, vector<1x16x16xbf16>
    %8 = vector.shape_cast %7 : vector<1x16x16xbf16> to vector<16x16xbf16>
    %cst_8 = arith.constant dense<0.000000e+00> : vector<16x128xf32>
    %9 = tpu.matmul %8, %6, %cst_8 {dimension_numbers = #tpu.dot_dimension_numbers<[1], [0], [0], [1], [0, 0, 1, 1], [], []>} : vector<16x16xbf16>, vector<16x128xbf16>, vector<16x128xf32> -> vector<16x128xf32>
    %10 = arith.addf %5, %9 : vector<16x128xf32>
    %11 = vector.extract_strided_slice %1 {offsets = [0, 8], sizes = [16, 128], strides = [1, 1]} : vector<16x256xbf16> to vector<16x128xbf16>
    %c6 = arith.constant 6 : index
    %c0_9 = arith.constant 0 : index
    %c0_10 = arith.constant 0 : index
    %12 = vector.load %arg2[%c6, %c0_9, %c0_10] : memref<9x16x16xbf16, #tpu.memory_space<vmem>>, vector<1x16x16xbf16>
    %13 = vector.shape_cast %12 : vector<1x16x16xbf16> to vector<16x16xbf16>
    %cst_11 = arith.constant dense<0.000000e+00> : vector<16x128xf32>
    %14 = tpu.matmul %13, %11, %cst_11 {dimension_numbers = #tpu.dot_dimension_numbers<[1], [0], [0], [1], [0, 0, 1, 1], [], []>} : vector<16x16xbf16>, vector<16x128xbf16>, vector<16x128xf32> -> vector<16x128xf32>
    %15 = arith.addf %10, %14 : vector<16x128xf32>
    %16 = vector.extract_strided_slice %1 {offsets = [0, 9], sizes = [16, 128], strides = [1, 1]} : vector<16x256xbf16> to vector<16x128xbf16>
    %c8 = arith.constant 8 : index
    %c0_12 = arith.constant 0 : index
    %c0_13 = arith.constant 0 : index
    %17 = vector.load %arg2[%c8, %c0_12, %c0_13] : memref<9x16x16xbf16, #tpu.memory_space<vmem>>, vector<1x16x16xbf16>
    %18 = vector.shape_cast %17 : vector<1x16x16xbf16> to vector<16x16xbf16>
    %cst_14 = arith.constant dense<0.000000e+00> : vector<16x128xf32>
    %19 = tpu.matmul %18, %16, %cst_14 {dimension_numbers = #tpu.dot_dimension_numbers<[1], [0], [0], [1], [0, 0, 1, 1], [], []>} : vector<16x16xbf16>, vector<16x128xbf16>, vector<16x128xf32> -> vector<16x128xf32>
    %20 = arith.addf %15, %19 : vector<16x128xf32>
    %c0_15 = arith.constant 0 : index
    %c1 = arith.constant 1 : index
    %c0_16 = arith.constant 0 : index
    %c0_17 = arith.constant 0 : index
    %21 = vector.load %arg1[%c0_15, %c1, %c0_16, %c0_17] : memref<1x4x16x256xbf16, #tpu.memory_space<vmem>>, vector<1x1x16x256xbf16>
    %22 = vector.shape_cast %21 : vector<1x1x16x256xbf16> to vector<16x256xbf16>
    %23 = vector.extract_strided_slice %22 {offsets = [0, 0], sizes = [16, 128], strides = [1, 1]} : vector<16x256xbf16> to vector<16x128xbf16>
    %c1_18 = arith.constant 1 : index
    %c0_19 = arith.constant 0 : index
    %c0_20 = arith.constant 0 : index
    %24 = vector.load %arg2[%c1_18, %c0_19, %c0_20] : memref<9x16x16xbf16, #tpu.memory_space<vmem>>, vector<1x16x16xbf16>
    %25 = vector.shape_cast %24 : vector<1x16x16xbf16> to vector<16x16xbf16>
    %cst_21 = arith.constant dense<0.000000e+00> : vector<16x128xf32>
    %26 = tpu.matmul %25, %23, %cst_21 {dimension_numbers = #tpu.dot_dimension_numbers<[1], [0], [0], [1], [0, 0, 1, 1], [], []>} : vector<16x16xbf16>, vector<16x128xbf16>, vector<16x128xf32> -> vector<16x128xf32>
    %27 = arith.addf %20, %26 : vector<16x128xf32>
    %28 = vector.extract_strided_slice %22 {offsets = [0, 8], sizes = [16, 128], strides = [1, 1]} : vector<16x256xbf16> to vector<16x128xbf16>
    %c7 = arith.constant 7 : index
    %c0_22 = arith.constant 0 : index
    %c0_23 = arith.constant 0 : index
    %29 = vector.load %arg2[%c7, %c0_22, %c0_23] : memref<9x16x16xbf16, #tpu.memory_space<vmem>>, vector<1x16x16xbf16>
    %30 = vector.shape_cast %29 : vector<1x16x16xbf16> to vector<16x16xbf16>
    %cst_24 = arith.constant dense<0.000000e+00> : vector<16x128xf32>
    %31 = tpu.matmul %30, %28, %cst_24 {dimension_numbers = #tpu.dot_dimension_numbers<[1], [0], [0], [1], [0, 0, 1, 1], [], []>} : vector<16x16xbf16>, vector<16x128xbf16>, vector<16x128xf32> -> vector<16x128xf32>
    %32 = arith.addf %27, %31 : vector<16x128xf32>
    %c0_25 = arith.constant 0 : index
    %c2_26 = arith.constant 2 : index
    %c0_27 = arith.constant 0 : index
    %c0_28 = arith.constant 0 : index
    %33 = vector.load %arg1[%c0_25, %c2_26, %c0_27, %c0_28] : memref<1x4x16x256xbf16, #tpu.memory_space<vmem>>, vector<1x1x16x256xbf16>
    %34 = vector.shape_cast %33 : vector<1x1x16x256xbf16> to vector<16x256xbf16>
    %35 = vector.extract_strided_slice %34 {offsets = [0, 0], sizes = [16, 128], strides = [1, 1]} : vector<16x256xbf16> to vector<16x128xbf16>
    %c3 = arith.constant 3 : index
    %c0_29 = arith.constant 0 : index
    %c0_30 = arith.constant 0 : index
    %36 = vector.load %arg2[%c3, %c0_29, %c0_30] : memref<9x16x16xbf16, #tpu.memory_space<vmem>>, vector<1x16x16xbf16>
    %37 = vector.shape_cast %36 : vector<1x16x16xbf16> to vector<16x16xbf16>
    %cst_31 = arith.constant dense<0.000000e+00> : vector<16x128xf32>
    %38 = tpu.matmul %37, %35, %cst_31 {dimension_numbers = #tpu.dot_dimension_numbers<[1], [0], [0], [1], [0, 0, 1, 1], [], []>} : vector<16x16xbf16>, vector<16x128xbf16>, vector<16x128xf32> -> vector<16x128xf32>
    %39 = arith.addf %32, %38 : vector<16x128xf32>
    %40 = vector.extract_strided_slice %34 {offsets = [0, 1], sizes = [16, 128], strides = [1, 1]} : vector<16x256xbf16> to vector<16x128xbf16>
    %c5 = arith.constant 5 : index
    %c0_32 = arith.constant 0 : index
    %c0_33 = arith.constant 0 : index
    %41 = vector.load %arg2[%c5, %c0_32, %c0_33] : memref<9x16x16xbf16, #tpu.memory_space<vmem>>, vector<1x16x16xbf16>
    %42 = vector.shape_cast %41 : vector<1x16x16xbf16> to vector<16x16xbf16>
    %cst_34 = arith.constant dense<0.000000e+00> : vector<16x128xf32>
    %43 = tpu.matmul %42, %40, %cst_34 {dimension_numbers = #tpu.dot_dimension_numbers<[1], [0], [0], [1], [0, 0, 1, 1], [], []>} : vector<16x16xbf16>, vector<16x128xbf16>, vector<16x128xf32> -> vector<16x128xf32>
    %44 = arith.addf %39, %43 : vector<16x128xf32>
    %c0_35 = arith.constant 0 : index
    %c3_36 = arith.constant 3 : index
    %c0_37 = arith.constant 0 : index
    %c0_38 = arith.constant 0 : index
    %45 = vector.load %arg1[%c0_35, %c3_36, %c0_37, %c0_38] : memref<1x4x16x256xbf16, #tpu.memory_space<vmem>>, vector<1x1x16x256xbf16>
    %46 = vector.shape_cast %45 : vector<1x1x16x256xbf16> to vector<16x256xbf16>
    %47 = vector.extract_strided_slice %46 {offsets = [0, 0], sizes = [16, 128], strides = [1, 1]} : vector<16x256xbf16> to vector<16x128xbf16>
    %c4 = arith.constant 4 : index
    %c0_39 = arith.constant 0 : index
    %c0_40 = arith.constant 0 : index
    %48 = vector.load %arg2[%c4, %c0_39, %c0_40] : memref<9x16x16xbf16, #tpu.memory_space<vmem>>, vector<1x16x16xbf16>
    %49 = vector.shape_cast %48 : vector<1x16x16xbf16> to vector<16x16xbf16>
    %cst_41 = arith.constant dense<0.000000e+00> : vector<16x128xf32>
    %50 = tpu.matmul %49, %47, %cst_41 {dimension_numbers = #tpu.dot_dimension_numbers<[1], [0], [0], [1], [0, 0, 1, 1], [], []>} : vector<16x16xbf16>, vector<16x128xbf16>, vector<16x128xf32> -> vector<16x128xf32>
    %51 = arith.addf %44, %50 : vector<16x128xf32>
    %c0_42 = arith.constant 0 : index
    %c0_43 = arith.constant 0 : index
    %52 = vector.load %arg3[%c0_42, %c0_43] : memref<16x1xf32, #tpu.memory_space<vmem>>, vector<16x1xf32>
    %53 = vector.broadcast %52 : vector<16x1xf32> to vector<16x128xf32>
    %54 = arith.addf %51, %53 : vector<16x128xf32>
    %c0_44 = arith.constant 0 : index
    %c0_45 = arith.constant 0 : index
    %c0_46 = arith.constant 0 : index
    %55 = vector.load %arg4[%c0_44, %c0_45, %c0_46] : memref<1x16x128xf32, #tpu.memory_space<vmem>>, vector<1x16x128xf32>
    %56 = vector.shape_cast %55 : vector<1x16x128xf32> to vector<16x128xf32>
    %57 = vector.shape_cast %54 : vector<16x128xf32> to vector<1x16x128xf32>
    tpu.vector_store %arg4[%c0_44, %c0_45, %c0_46], %57 {strides = array<i32>} : memref<1x16x128xf32, #tpu.memory_space<vmem>>, vector<1x16x128xf32>,
    return
  }
  func.func @transform_0(%arg0: i32) -> (i32, i32, i32, i32) {
    %c0_i32 = arith.constant 0 : i32
    %c0_i32_0 = arith.constant 0 : i32
    %c0_i32_1 = arith.constant 0 : i32
    %c0_i32_2 = arith.constant 0 : i32
    return %arg0, %c0_i32, %c0_i32_0, %c0_i32_1 : i32, i32, i32, i32
  }
  func.func @transform_1(%arg0: i32) -> (i32, i32, i32) {
    %c0_i32 = arith.constant 0 : i32
    %c0_i32_0 = arith.constant 0 : i32
    %c0_i32_1 = arith.constant 0 : i32
    %c0_i32_2 = arith.constant 0 : i32
    return %c0_i32, %c0_i32_0, %c0_i32_1 : i32, i32, i32
  }
  func.func @transform_2(%arg0: i32) -> (i32, i32) {
    %c0_i32 = arith.constant 0 : i32
    %c0_i32_0 = arith.constant 0 : i32
    %c0_i32_1 = arith.constant 0 : i32
    return %c0_i32, %c0_i32_0 : i32, i32
  }
  func.func @transform_3(%arg0: i32) -> (i32, i32, i32) {
    %c0_i32 = arith.constant 0 : i32
    %c0_i32_0 = arith.constant 0 : i32
    %c0_i32_1 = arith.constant 0 : i32
    return %arg0, %c0_i32, %c0_i32_0 : i32, i32, i32
  }
}

module attributes {stable_mosaic.version = 11 : i64} {
  func.func @_squash_lane_kernel(%arg0: i32, %arg1: memref<8x128xf32, #tpu.memory_space<vmem>>, %arg2: memref<128x128xf32, #tpu.memory_space<vmem>>, %arg3: memref<8x128xf32, #tpu.memory_space<vmem>>) attributes {dimension_semantics = [#tpu.dimension_semantics<parallel>], iteration_bounds = array<i64: 2>, scalar_prefetch = 0 : i64, scratch_operands = 0 : i64, tpu.core_type = #tpu.core_type<tc>, window_params = [{transform_indices = @transform_0, window_bounds = array<i64: 8, 128>}, {pipeline_mode = #tpu.pipeline_mode<synchronous>, transform_indices = @transform_1, window_bounds = array<i64: 128, 128>}, {transform_indices = @transform_2, window_bounds = array<i64: 8, 128>}]} {
    %c0 = arith.constant 0 : index
    %c0_0 = arith.constant 0 : index
    %0 = vector.load %arg1[%c0, %c0_0] : memref<8x128xf32, #tpu.memory_space<vmem>>, vector<8x128xf32>
    %1 = arith.mulf %0, %0 : vector<8x128xf32>
    %c0_1 = arith.constant 0 : index
    %c0_2 = arith.constant 0 : index
    %2 = vector.load %arg2[%c0_1, %c0_2] : memref<128x128xf32, #tpu.memory_space<vmem>>, vector<128x128xf32>
    %cst = arith.constant dense<0.000000e+00> : vector<8x128xf32>
    %3 = tpu.matmul %1, %2, %cst {dimension_numbers = #tpu.dot_dimension_numbers<[1], [0], [0], [1], [0, 0, 1, 1], [], []>} : vector<8x128xf32>, vector<128x128xf32>, vector<8x128xf32> -> vector<8x128xf32>
    %4 = math.sqrt %3 : vector<8x128xf32>
    %cst_3 = arith.constant 1.000000e+00 : f32
    %5 = vector.broadcast %cst_3 : f32 to vector<8x128xf32>
    %6 = arith.addf %5, %3 : vector<8x128xf32>
    %cst_4 = arith.constant 9.99999993E-9 : f32
    %7 = vector.broadcast %cst_4 : f32 to vector<8x128xf32>
    %8 = arith.addf %4, %7 : vector<8x128xf32>
    %9 = arith.mulf %6, %8 : vector<8x128xf32>
    %10 = tpu.reciprocal %9 {approx = true} : vector<8x128xf32> -> vector<8x128xf32>
    %11 = arith.mulf %3, %10 : vector<8x128xf32>
    %12 = arith.mulf %0, %11 : vector<8x128xf32>
    %c0_5 = arith.constant 0 : index
    %c0_6 = arith.constant 0 : index
    %13 = vector.load %arg3[%c0_5, %c0_6] : memref<8x128xf32, #tpu.memory_space<vmem>>, vector<8x128xf32>
    tpu.vector_store %arg3[%c0_5, %c0_6], %12 {strides = array<i32>} : memref<8x128xf32, #tpu.memory_space<vmem>>, vector<8x128xf32>,
    return
  }
  func.func @transform_0(%arg0: i32) -> (i32, i32) {
    %c0_i32 = arith.constant 0 : i32
    %c0_i32_0 = arith.constant 0 : i32
    return %arg0, %c0_i32 : i32, i32
  }
  func.func @transform_1(%arg0: i32) -> (i32, i32) {
    %c0_i32 = arith.constant 0 : i32
    %c0_i32_0 = arith.constant 0 : i32
    %c0_i32_1 = arith.constant 0 : i32
    return %c0_i32, %c0_i32_0 : i32, i32
  }
  func.func @transform_2(%arg0: i32) -> (i32, i32) {
    %c0_i32 = arith.constant 0 : i32
    %c0_i32_0 = arith.constant 0 : i32
    return %arg0, %c0_i32 : i32, i32
  }
}

</mosaic_0001>

<bundles_post_ra>
// kernel: primary_capsule_forward.3
= control target key start
LH: loop header
LB: loop body
LE: loop exit
PB: predicated region body
PF: predicated region fallthrough
CT: control target
= control target key end

     0   :  { %s293_s9 = smov 0   ;;  %s365_s0 = inlined_call_operand.vmem [shape: f32[16,128], index: 0, kind: input, shape index: {}]   ;;  %s366_s1 = inlined_call_operand.vmem [shape: f32[128,128], index: 1, kind: input, shape index: {}]   ;;  %s367_s2 = inlined_call_operand.vmem [shape: f32[16,128], index: 2, kind: output, shape index: {}]  }
   0x1 LB: > { %s249_s10 = sadd.s32 4294967295, %s276_s9   ;;  %p253_p0 = scmp.ge.s32.totalorder %s276_s9, 1  ;;  %s276_s9 = sphi %s293_s9, %s12_s9  }
   0x2   : > { %p111_p1 = scmp.lt.s32.totalorder %s276_s9, 3 }
   0x4   : > { %p112_p2 = pnand %p253_p0, %p111_p1 }
   0x5   : > { %p131_p3 = scmp.lt.s32.totalorder (!%p112_p2), %s249_s10, 1 }
   0x6   : > { %115 = sbr.rel (%p112_p2) target bundleno = 206 (0xce), region = 28 }
   0xb   : > { %v156_v0 = vld [vmem:[%s366_s1 + $0x78] sm:$0xff]  ;;  %v155_v1 = vld [vmem:[%s366_s1 + $0x70] sm:$0xff]  ;;  %v154_v2 = vld [vmem:[%s366_s1 + $0x68] sm:$0xff]  ;;  %s369_s10 = smov (!%p131_p3, %s249_s10), 1 }
   0xc   : > { %157 = vmatpush.msra.mxu0 %v156_v0  ;;  %v153_v3 = vld [vmem:[%s366_s1 + $0x60] sm:$0xff]  ;;  %v152_v4 = vld [vmem:[%s366_s1 + $0x58] sm:$0xff]  ;;  %v151_v5 = vld [vmem:[%s366_s1 + $0x50] sm:$0xff]  ;;  %s254_s5 = sshll.u32 %s369_s10, 3 }
   0xd   : > { %v150_v6 = vld [vmem:[%s366_s1 + $0x48] sm:$0xff]  ;;  %v149_v7 = vld [vmem:[%s366_s1 + $0x40] sm:$0xff]  ;;  %v148_v8 = vld [vmem:[%s366_s1 + $0x38] sm:$0xff]  ;;  %s134_s14 = scalar_lea.vmem %s365_s0, %s254_s5  ;;  %s138_s23 = scalar_lea.vmem %s367_s2, %s254_s5 }
   0xe   : > { %158 = vmatpush.msra.mxu0 %v155_v1  ;;  %v147_v9 = vld [vmem:[%s366_s1 + $0x30] sm:$0xff]  ;;  %v146_v10 = vld [vmem:[%s366_s1 + $0x28] sm:$0xff]  ;;  %v145_v11 = vld [vmem:[%s366_s1 + $0x20] sm:$0xff] }
   0xf   : > { %v144_v12 = vld [vmem:[%s366_s1 + $0x18] sm:$0xff]  ;;  %v143_v13 = vld [vmem:[%s366_s1 + $0x10] sm:$0xff]  ;;  %v139_v14 = vld [vmem:[%s134_s14] sm:$0xff] }
  0x10   : > { %159 = vmatpush.msra.mxu0 %v154_v2  ;;  %v142_v15 = vld [vmem:[%s366_s1 + $0x8] sm:$0xff]  ;;  %v141_v16 = vld [vmem:[%s366_s1] sm:$0xff]  ;;  %v140_v17 = vmul.f32 %v139_v14, %v139_v14 }
  0x12   : > { %160 = vmatpush.msra.mxu0 %v153_v3 }
  0x14   : > { %161 = vmatpush.msra.mxu0 %v152_v4 }
  0x16   : > { %162 = vmatpush.msra.mxu0 %v151_v5 }
  0x18   : > { %163 = vmatpush.msra.mxu0 %v150_v6 }
  0x1a   : > { %164 = vmatpush.msra.mxu0 %v149_v7 }
  0x1c   : > { %165 = vmatpush.msra.mxu0 %v148_v8 }
  0x1e   : > { %166 = vmatpush.msra.mxu0 %v147_v9 }
  0x20   : > { %167 = vmatpush.msra.mxu0 %v146_v10 }
  0x22   : > { %168 = vmatpush.msra.mxu0 %v145_v11 }
  0x24   : > { %169 = vmatpush.msra.mxu0 %v144_v12 }
  0x26   : > { %170 = vmatpush.msra.mxu0 %v143_v13 }
  0x28   : > { %171 = vmatpush.msra.mxu0 %v142_v15 }
  0x2a   : > { %172 = vmatpush.msra.mxu0 %v141_v16 }
  0x2b   : > { %173 = vmatmul.f32.vlgmr.msra.gmra.mxu0 %v140_v17 }
  0xa8   : > { %v174_v18 = vpop.f32.mrf.mxu0 }
  0xa9   : > { %266 = vrsqrt.f32 %v174_v18  ;;  %vm184_vm0 = vcmp.eq.f32.partialorder %v174_v18, inf  ;;  %v187_v26 = vand.u32 2147483648, %v174_v18  ;;  %vm186_vm1 = vcmp.eq.f32.partialorder %v174_v18, 0.0 }
  0xaa   : > { %v189_v29 = vadd.f32 1.0, %v174_v18 }
  0xaf   : > { %v267_v19 = vpop.eup %266 }
  0xb0   : > { %v178_v20 = vmul.f32 %v267_v19, %v174_v18 }
  0xb2   : > { %v179_v21 = vmul.f32 %v267_v19, %v178_v20 }
  0xb4   : > { %v180_v22 = vmul.f32 0.5, %v179_v21 }
  0xb6   : > { %v181_v23 = vsub.f32 1.5, %v180_v22 }
  0xb8   : > { %v182_v24 = vmul.f32 %v267_v19, %v181_v23 }
  0xba   : > { %v183_v25 = vmul.f32 %v182_v24, %v174_v18 }
  0xbc   : > { %v185_v27 = vsel %vm184_vm0, %v174_v18, %v183_v25 }
  0xbd   : > { %v188_v28 = vsel %vm186_vm1, %v187_v26, %v185_v27 }
  0xbe   : > { %v190_v30 = vadd.f32 1e-08, %v188_v28 }
  0xc0   : > { %v191_v31 = vmul.f32 %v190_v30, %v189_v29 }
  0xc2   : > { %268 = vrcp.f32 %v191_v31 }
  0xc8   : > { %v269_v32 = vpop.eup %268 }
  0xc9   : > { %v193_v33 = vmul.f32 %v269_v32, %v174_v18 }
  0xcb   : > { %v194_v34 = vmul.f32 %v193_v33, %v139_v14 }
  0xcd   : > { %195 = vst [vmem:[%s138_s23] sm:$0xff] %v194_v34 }
  0xce PF: > { %s12_s9 = sadd.s32 1, %s276_s9  }
  0xcf   : > { %p9_p4 = scmp.ge.s32.totalorder %s12_s9, 4  }
  0xd1   :  { %11 = sbr.rel (!%p9_p4) target bundleno = 1 (0x1), region = 58 }

// kernel: primary_capsule_forward.2
= control target key start
LH: loop header
LB: loop body
LE: loop exit
PB: predicated region body
PF: predicated region fallthrough
CT: control target
= control target key end

     0   :  { %s730_s12 = smov 0   ;;  %s813_s0 = inlined_call_operand.vmem [shape: bf16[2,4,16,256], index: 0, kind: input, shape index: {}]   ;;  %s814_s1 = inlined_call_operand.vmem [shape: bf16[9,16,16], index: 1, kind: input, shape index: {}]   ;;  %s815_s2 = inlined_call_operand.vmem [shape: f32[16,1], index: 2, kind: input, shape index: {}]   ;;  %s816_s3 = inlined_call_operand.vmem [shape: f32[2,16,128], index: 3, kind: output, shape index: {}]  }
   0x1 LB: > { %s559_s13 = sadd.s32 4294967295, %s704_s12   ;;  %p563_p0 = scmp.ge.s32.totalorder %s704_s12, 1  ;;  %s704_s12 = sphi %s730_s12, %s13_s12  }
   0x2   : > { %p137_p1 = scmp.lt.s32.totalorder %s704_s12, 3 }
   0x4   : > { %p138_p2 = pnand %p563_p0, %p137_p1 }
   0x5   : > { %p161_p3 = scmp.lt.s32.totalorder (!%p138_p2), %s559_s13, 1  ;;  %s706_s18 = smov (!%p138_p2), 120  }
   0x6   : > { %141 = sbr.rel (%p138_p2) target bundleno = 315 (0x13b), region = 32  ;;  %s707_s19 = smov (!%p138_p2), 127  }
   0x7   : > { %s708_s20 = smov (!%p138_p2), 119  }
   0xb   : > { %s818_s13 = smov (!%p161_p3, %s559_s13), 1  ;;  %vm199_vm0 = vcmask 130048   ;;  %v669_v19 = vld [vmem:[%s814_s1] sm:$0xff]  ;;  %vm286_vm1 = vcmask 973824   ;;  %vm196_vm2 = vcmask 1039360   ;;  %vm252_vm3 = vcmask 982016  }
   0xc   : > { %s665_s14 = sshll.u32 %s818_s13, 6  ;;  %v672_v22 = vld [vmem:[%s814_s1 + $0x40] sm:$0xff]  ;;  %v670_v31 = vld [vmem:[%s814_s1 + $0x10] sm:$0xff]  ;;  %v489_v35 = vld [vmem:[%s815_s2 + $0x8] sm:$0xff]  ;;  %v709_v36 = vmov 0  }
   0xd   : > { %s744_s17 = scalar_lea.vmem %s813_s0, %s665_s14  ;;  %v671_v32 = vld [vmem:[%s814_s1 + $0x30] sm:$0xff]  ;;  %v488_v34 = vld [vmem:[%s815_s2] sm:$0xff]  ;;  %695 = vset.pattern.permute.xlu1 %v709_v36  ;;  %696 = vset.pattern.permute.xlu2 %v709_v36  ;;  %v680_v40 = vld [vmem:[%s814_s1 + $0x28] sm:$0xff] }
   0xe   : > { %v576_v0 = vld [vmem:[%s744_s17] sm:$0xf]  ;;  %v668_v1 = vld [vmem:[%s744_s17 + $0x4] sm:$0xf0]  ;;  %v667_v3 = vld [vmem:[%s744_s17 + $0x4] sm:$0xf]  ;;  %697 = vset.pattern.permute.xlu0 %v709_v36 }
   0xf   : > { %v577_v2 = vor.u32 %v668_v1, %v576_v0  ;;  %v578_v4 = vld [vmem:[%s744_s17 + $0x8] sm:$0xf0]  ;;  %v677_v6 = vld [vmem:[%s744_s17 + $0x24] sm:$0xf]  ;;  %v636_v8 = vld [vmem:[%s744_s17 + $0x20] sm:$0xf] }
  0x10   : > { %v581_v5 = vor.u32 %v667_v3, %v578_v4  ;;  %v645_v7 = vld [vmem:[%s744_s17 + $0x28] sm:$0xf0]  ;;  %v678_v9 = vld [vmem:[%s744_s17 + $0x24] sm:$0xf0]  ;;  %v612_v10 = vld [vmem:[%s744_s17 + $0x10] sm:$0xf] }
  0x11   : > { %248 = vrot.lane.b32.xlu1 %v577_v2, %s706_s18  ;;  %192 = vrot.lane.b32.xlu0 %v577_v2, %s707_s19  ;;  %v674_v11 = vld [vmem:[%s744_s17 + $0x14] sm:$0xf0]  ;;  %v648_v12 = vor.u32 %v677_v6, %v645_v7  ;;  %v637_v13 = vor.u32 %v678_v9, %v636_v8  ;;  %v673_v15 = vld [vmem:[%s744_s17 + $0x14] sm:$0xf] }
  0x12   : > { %282 = vrot.lane.b32.xlu2 %v577_v2, %s708_s20  ;;  %233 = vmatpush.bf16.msra.mxu1 %v577_v2  ;;  %v613_v14 = vor.u32 %v674_v11, %v612_v10  ;;  %v621_v16 = vld [vmem:[%s744_s17 + $0x18] sm:$0xf0]  ;;  %v660_v25 = vld [vmem:[%s744_s17 + $0x30] sm:$0xf]  ;;  %v681_v26 = vld [vmem:[%s744_s17 + $0x34] sm:$0xf0] }
  0x13   : > { %v624_v17 = vor.u32 %v673_v15, %v621_v16  ;;  %v661_v33 = vor.u32 %v681_v26, %v660_v25  ;;  %v675_v44 = vld [vmem:[%s814_s1 + $0x8] sm:$0xff]  ;;  %v679_v45 = vld [vmem:[%s814_s1 + $0x18] sm:$0xff]  ;;  %v682_v47 = vld [vmem:[%s814_s1 + $0x20] sm:$0xff] }
  0x14   : > { %v676_v46 = vld [vmem:[%s814_s1 + $0x38] sm:$0xff] }
  0x15   : > { %587 = vmatmul.msk.bf16.vlgmr.msra.gmra.mxu1 %vm199_vm0, %v669_v19 }
  0x19   : > { %250 = vrot.lane.b32.xlu1 %v581_v5, %s706_s18  ;;  %194 = vrot.lane.b32.xlu0 %v581_v5, %s707_s19 }
  0x1a   : > { %284 = vrot.lane.b32.xlu2 %v581_v5, %s708_s20 }
  0x21   : > { %429 = vrot.lane.b32.xlu1 %v648_v12, %s707_s19  ;;  %427 = vrot.lane.b32.xlu0 %v637_v13, %s707_s19 }
  0x22   : > { %355 = vrot.lane.b32.xlu2 %v613_v14, %s706_s18 }
  0x29   : > { %357 = vrot.lane.b32.xlu0 %v624_v17, %s706_s18  ;;  %492 = vperm.xlu1 %695, %v488_v34   ;;  %s666_s18 = sshll.u32 %s818_s13, 4 }
  0x2a   : > { %497 = vperm.xlu2 %696, %v489_v35   ;;  %s170_s21 = scalar_lea.vmem %s816_s3, %s666_s18 }
  0x6c   : > { %v283_v18 = vpop.permute.xlu2 %282 }
  0x74   : > { %v285_v20 = vpop.permute.xlu2 %284 }
  0x75   : > { %v287_v21 = vsel %vm286_vm1, %v283_v18, %v285_v20 }
  0x76   : > { %299 = vmatpush.bf16.msra.mxu3 %v287_v21 }
  0x79   : > { %601 = vmatmul.msk.bf16.vlgmr.msra.gmra.mxu3 %vm199_vm0, %v672_v22 }
  0x7c   : > { %v356_v41 = vpop.permute.xlu2 %355 }
  0x83   : > { %v249_v23 = vpop.permute.xlu1 %248  ;;  %v193_v24 = vpop.permute.xlu0 %192 }
  0x84   : > { %v498_v19 = vpop.permute.xlu2 %497 }
  0x8b   : > { %v251_v27 = vpop.permute.xlu1 %250  ;;  %v195_v28 = vpop.permute.xlu0 %194 }
  0x8c   : > { %v197_v29 = vsel %vm196_vm2, %v193_v24, %v195_v28  ;;  %v253_v30 = vsel %vm252_vm3, %v249_v23, %v251_v27 }
  0x8d   : > { %210 = vmatpush.bf16.msra.mxu0 %v197_v29  ;;  %265 = vmatpush.bf16.msra.mxu2 %v253_v30 }
  0x90   : > { %582 = vmatmul.msk.bf16.vlgmr.msra.gmra.mxu0 %vm199_vm0, %v670_v31  ;;  %594 = vmatmul.msk.bf16.vlgmr.msra.gmra.mxu2 %vm199_vm0, %v671_v32 }
  0x91   : > { %335 = vmatpush.bf16.msrb.mxu0 %v613_v14  ;;  %407 = vmatpush.bf16.msrb.mxu2 %v637_v13 }
  0x92   : > { %v235_v49 = vpop.f32.mrf.mxu1 }
  0x93   : > { %v430_v37 = vpop.permute.xlu1 %429  ;;  %v428_v38 = vpop.permute.xlu0 %427 }
  0x94   : > { %v431_v39 = vsel %vm196_vm2, %v428_v38, %v430_v37 }
  0x95   : > { %479 = vmatpush.bf16.msra.mxu0 %v661_v33  ;;  %443 = vmatpush.bf16.msrb.mxu3 %v431_v39 }
  0x98   : > { %649 = vmatmul.msk.bf16.vlgmr.msrb.gmra.mxu3 %vm199_vm0, %v680_v40 }
  0x9a   : > { %v237_v53 = vpop.f32.mrf.mxu1 }
  0x9b   : > { %v358_v42 = vpop.permute.xlu0 %357  ;;  %v493_v9 = vpop.permute.xlu1 %492 }
  0x9c   : > { %v359_v43 = vsel %vm252_vm3, %v356_v41, %v358_v42 }
  0x9d   : > { %371 = vmatpush.bf16.msrb.mxu1 %v359_v43 }
  0xa0   : > { %614 = vmatmul.msk.bf16.vlgmr.msrb.gmra.mxu0 %vm199_vm0, %v675_v44  ;;  %638 = vmatmul.msk.bf16.vlgmr.msrb.gmra.mxu2 %vm199_vm0, %v679_v45 }
  0xa1   : > { %625 = vmatmul.msk.bf16.vlgmr.msrb.gmra.mxu1 %vm199_vm0, %v676_v46 }
  0xb0   : > { %662 = vmatmul.msk.bf16.vlgmr.msra.gmra.mxu0 %vm199_vm0, %v682_v47 }
  0xfc   : > { %v301_v52 = vpop.f32.mrf.mxu3 }
 0x104   : > { %v303_v58 = vpop.f32.mrf.mxu3 }
 0x10d   : > { %v212_v48 = vpop.f32.mrf.mxu0 }
 0x10e   : > { %v236_v54 = vadd.f32 %v235_v49, %v212_v48 }
 0x113   : > { %v267_v50 = vpop.f32.mrf.mxu2 }
 0x114   : > { %v272_v56 = vadd.f32 %v267_v50, %v236_v54 }
 0x115   : > { %v214_v51 = vpop.f32.mrf.mxu0 }
 0x116   : > { %v306_v59 = vadd.f32 %v301_v52, %v272_v56  ;;  %v238_v61 = vadd.f32 %v237_v53, %v214_v51 }
 0x11b   : > { %v269_v55 = vpop.f32.mrf.mxu2  ;;  %v445_v5 = vpop.f32.mrf.mxu3 }
 0x11c   : > { %v273_v0 = vadd.f32 %v269_v55, %v238_v61 }
 0x11d   : > { %v337_v57 = vpop.f32.mrf.mxu0 }
 0x11e   : > { %v373_v60 = vpop.f32.mrf.mxu1  ;;  %v342_v62 = vadd.f32 %v337_v57, %v306_v59  ;;  %v307_v3 = vadd.f32 %v303_v58, %v273_v0 }
 0x120   : > { %v378_v2 = vadd.f32 %v373_v60, %v342_v62 }
 0x123   : > { %v409_v63 = vpop.f32.mrf.mxu2  ;;  %v447_v16 = vpop.f32.mrf.mxu3 }
 0x124   : > { %v414_v4 = vadd.f32 %v409_v63, %v378_v2 }
 0x125   : > { %v339_v1 = vpop.f32.mrf.mxu0 }
 0x126   : > { %v343_v6 = vadd.f32 %v339_v1, %v307_v3  ;;  %v375_v7 = vpop.f32.mrf.mxu1  ;;  %v450_v8 = vadd.f32 %v445_v5, %v414_v4 }
 0x128   : > { %v379_v12 = vadd.f32 %v375_v7, %v343_v6 }
 0x12b   : > { %v411_v10 = vpop.f32.mrf.mxu2 }
 0x12c   : > { %v415_v14 = vadd.f32 %v411_v10, %v379_v12 }
 0x12d   : > { %v481_v11 = vpop.f32.mrf.mxu0 }
 0x12e   : > { %v486_v13 = vadd.f32 %v481_v11, %v450_v8  ;;  %v451_v17 = vadd.f32 %v447_v16, %v415_v14 }
 0x130   : > { %v500_v15 = vadd.f32 %v493_v9, %v486_v13 }
 0x132   : > { %502 = vst [vmem:[%s170_s21] sm:$0xff] %v500_v15 }
 0x135   : > { %v483_v18 = vpop.f32.mrf.mxu0 }
 0x136   : > { %v487_v20 = vadd.f32 %v483_v18, %v451_v17 }
 0x138   : > { %v501_v21 = vadd.f32 %v498_v19, %v487_v20 }
 0x13a   : > { %503 = vst [vmem:[%s170_s21 + $0x8] sm:$0xff] %v501_v21 }
 0x13b PF: > { %s13_s12 = sadd.s32 1, %s704_s12  }
 0x13c   : > { %p10_p4 = scmp.ge.s32.totalorder %s13_s12, 4  }
 0x13e   :  { %12 = sbr.rel (!%p10_p4) target bundleno = 1 (0x1), region = 73 }

</bundles_post_ra>
